<compile_context>
chip_gen: v7x
topology: tpu7x:2x2x1
jax: 0.10.0
libtpu: 0.0.40
codegen_flags: <defaults>
</compile_context>

<pallas_src>
import functools

import jax
import jax.numpy as jnp
from jax import lax
from jax.experimental import pallas as pl
from jax.experimental.pallas import tpu as pltpu

LANE = 128      # vreg lane width: node dim and feature dims are lane-dense


def _round_up(x, m):
    return (x + m - 1) // m * m


def _vmem_limit_bytes():
    """Per-generation scoped-VMEM limit with headroom for Mosaic scratch."""
    try:
        cap = pltpu.get_tpu_info().vmem_capacity_bytes
    except Exception:
        cap = 64 * 1024 * 1024          # conservative fallback (v7x-sized)
    return int(cap * 0.8)               # ~51 MiB on v7x, ~102 MiB on v5e/v6e


def gcn_fused_kernel(a_ref, x_ref, *rest, padded_dims, num_classes):
    """All GCN layers fused into one kernel; everything VMEM-resident.

    rest = (w0_ref, b0_ref, ..., w{L-1}_ref, b{L-1}_ref, o_ref).
    A and X arrive bf16 and 128-padded; weights arrive bf16, already transposed
    to (f_in_pad, f_out_pad); biases are f32 (1, f_out_pad); output is a
    lane-dense (N_pad, C_pad) f32 slab (sliced back to (N, C) in the wrapper).
    """
    net_depth = len(padded_dims)
    o_ref = rest[-1]
    wb = rest[:-1]

    a16 = a_ref[...]                                    # (N_pad, N_pad) bf16
    h = x_ref[...]                                      # (N_pad, F0_pad) bf16

    for l, (fin_pad, fout_pad) in enumerate(padded_dims):
        w16 = wb[2 * l][...]                            # (fin_pad, fout_pad) bf16
        b = wb[2 * l + 1][...]                          # (1, fout_pad) f32

        # Reassociate on the padded dims: A@(X@W) when f_out_pad < f_in_pad,
        # else (A@X)@W. bf16 MXU inputs, f32 accumulation.
        if fout_pad < fin_pad:
            t = jnp.dot(h, w16, preferred_element_type=jnp.float32)
            y = jnp.dot(a16, t.astype(jnp.bfloat16),
                        preferred_element_type=jnp.float32)
        else:
            t = jnp.dot(a16, h, preferred_element_type=jnp.float32)
            y = jnp.dot(t.astype(jnp.bfloat16), w16,
                        preferred_element_type=jnp.float32)

        y = y + b                                       # f32 VPU work

        if l < net_depth - 1:
            # ReLU with the bf16 cast fused in (next matmul needs bf16 anyway).
            h = jnp.maximum(y, 0.0).astype(jnp.bfloat16)
        else:
            # Softmax over the valid class lanes only; padded lanes -> exactly 0.
            col = lax.broadcasted_iota(jnp.int32, y.shape, 1)
            y = jnp.where(col < num_classes, y, -1e30)
            y = y - jnp.max(y, axis=1, keepdims=True)
            e = jnp.exp(y)
            denom = jnp.sum(e, axis=1, keepdims=True)
            o_ref[...] = (e * pl.reciprocal(denom, approx=False)).astype(o_ref.dtype)


def gcn_forward(A, x, params):
    """Fused forward pass: a single pallas_call for the whole network."""
    N = A.shape[0]
    F0 = x.shape[1]
    net_depth = len(params)
    layer_dims = tuple((w.shape[1], w.shape[0]) for w, _ in params)   # (f_in, f_out)
    C = layer_dims[-1][1]

    # Lane-dense, per-layer padded layout.
    n_pad = _round_up(N, LANE)
    f0_pad = _round_up(F0, LANE)
    padded_dims = tuple((_round_up(fi, LANE), _round_up(fo, LANE))
                        for fi, fo in layer_dims)
    c_pad = padded_dims[-1][1]

    # Pre-cast MXU operands to bf16 in the wrapper (half the DMA, no dup in VMEM).
    a_p = jnp.pad(A.astype(jnp.float32),
                  ((0, n_pad - N), (0, n_pad - N))).astype(jnp.bfloat16)
    x_p = jnp.pad(x.astype(jnp.float32),
                  ((0, n_pad - N), (0, f0_pad - F0))).astype(jnp.bfloat16)

    wb_inputs = []
    for (w, b), (fi, fo), (fip, fop) in zip(params, layer_dims, padded_dims):
        wt = jnp.pad(w.astype(jnp.float32).T,
                     ((0, fip - fi), (0, fop - fo))).astype(jnp.bfloat16)
        bp = jnp.pad(b.astype(jnp.float32).reshape(1, fo),
                     ((0, 0), (0, fop - fo)))                       # f32
        wb_inputs += [wt, bp]

    # Advisory cost estimate (padded MXU work, real DMA byte volume).
    flops = 0
    for fip, fop in padded_dims:
        flops += 2 * (n_pad * fip * fop + n_pad * n_pad * min(fip, fop))
    in_bytes = sum(int(t.size) * t.dtype.itemsize for t in (a_p, x_p, *wb_inputs))
    out_bytes = n_pad * c_pad * 4
    cost = pl.CostEstimate(flops=flops, transcendentals=N * C + N,
                           bytes_accessed=in_bytes + out_bytes)

    kernel = functools.partial(gcn_fused_kernel,
                               padded_dims=padded_dims, num_classes=C)
    n_inputs = 2 + 2 * net_depth
    out = pl.pallas_call(
        kernel,
        out_shape=jax.ShapeDtypeStruct((n_pad, c_pad), jnp.float32),
        in_specs=[pl.BlockSpec(memory_space=pltpu.MemorySpace.VMEM)] * n_inputs,
        out_specs=pl.BlockSpec(memory_space=pltpu.MemorySpace.VMEM),
        compiler_params=pltpu.CompilerParams(vmem_limit_bytes=_vmem_limit_bytes()),
        cost_estimate=cost,
    )(a_p, x_p, *wb_inputs)

    return out[:N, :C]


# ----------------------- pure-JAX references -----------------------

def gcn_forward_ref_f32(A, x, params):
    """Full-f32 reference matching the original PyTorch semantics."""
    net_depth = len(params)
    out = x
    for l, (w, b) in enumerate(params):
        y = (A @ out) @ w.T + b[None, :]
        out = jax.nn.softmax(y, axis=1) if l == net_depth - 1 else jnp.maximum(y, 0.0)
    return out


def gcn_forward_ref_matched(A, x, params):
    """Reference reproducing the kernel's bf16-in / f32-accumulate matmul math."""
    net_depth = len(params)
    a16 = A.astype(jnp.bfloat16)
    h = x.astype(jnp.bfloat16)
    for l, (w, b) in enumerate(params):
        f_out, f_in = w.shape
        fip, fop = _round_up(f_in, LANE), _round_up(f_out, LANE)
        w16 = w.T.astype(jnp.bfloat16)
        if fop < fip:
            t = jnp.dot(h, w16, preferred_element_type=jnp.float32)
            y = jnp.dot(a16, t.astype(jnp.bfloat16),
                        preferred_element_type=jnp.float32)
        else:
            t = jnp.dot(a16, h, preferred_element_type=jnp.float32)
            y = jnp.dot(t.astype(jnp.bfloat16), w16,
                        preferred_element_type=jnp.float32)
        y = y + b[None, :]
        if l < net_depth - 1:
            h = jnp.maximum(y, 0.0).astype(jnp.bfloat16)
        else:
            h = jax.nn.softmax(y, axis=1)
    return h


# ----------------------- deterministic setup -----------------------

def init_linear_params(key, in_features, out_features):
    """Deterministic init mirroring nn.Linear defaults (uniform +-1/sqrt(in))."""
    kw, kb = jax.random.split(key)
    bound = 1.0 / jnp.sqrt(jnp.float32(in_features))
    w = jax.random.uniform(kw, (out_features, in_features), jnp.float32, -bound, bound)
    b = jax.random.uniform(kb, (out_features,), jnp.float32, -bound, bound)
    return w, b


def build_gcn_params(key, N, C, H, F, net_depth):
    hd = [F] + [H] * (net_depth - 1) + [C]
    params = []
    for l in range(net_depth):
        key, sub = jax.random.split(key)
        params.append(init_linear_params(sub, hd[l], hd[l + 1]))
    return params


def make_normalized_adjacency(key, N):
    """Deterministic symmetric normalized adjacency D^-1/2 (adj+I) D^-1/2."""
    adj = (jax.random.uniform(key, (N, N)) > 0.7).astype(jnp.float32)
    adj = jnp.maximum(adj, adj.T)
    adj = adj + jnp.eye(N, dtype=jnp.float32)
    deg = jnp.sum(adj, axis=1)
    d_inv_sqrt = 1.0 / jnp.sqrt(deg)
    return adj * d_inv_sqrt[:, None] * d_inv_sqrt[None, :]


if __name__ == "__main__":
    # Small shapes consistent with the module: N nodes, C classes, H hidden, F feats.
    N, C, H, F, net_depth = 16, 8, 32, 32, 3

    key = jax.random.PRNGKey(0)
    k_adj, k_x, k_params = jax.random.split(key, 3)

    A = make_normalized_adjacency(k_adj, N)
    x = jax.random.normal(k_x, (N, F), jnp.float32)
    params = build_gcn_params(k_params, N, C, H, F, net_depth)

    out = jax.block_until_ready(gcn_forward(A, x, params))
    assert out.shape == (N, C)

    ref_matched = gcn_forward_ref_matched(A, x, params)   # same bf16/f32 math
    ref_f32 = gcn_forward_ref_f32(A, x, params)            # original f32 semantics
    assert jnp.allclose(out, ref_matched, atol=1e-2, rtol=1e-2), "mismatch vs matched ref"
    assert jnp.allclose(out, ref_f32, atol=5e-2, rtol=5e-2), "mismatch vs f32 ref"
    # rows of the softmax output sum to 1
    assert jnp.allclose(jnp.sum(out, axis=1), jnp.ones((N,)), atol=1e-3)

    print("KERNEL_OK")
</pallas_src>

<mosaic_0001>
module attributes {stable_mosaic.version = 11 : i64} {
  func.func @gcn_fused_kernel(%arg0: memref<128x128xbf16, #tpu.memory_space<vmem>>, %arg1: memref<128x128xbf16, #tpu.memory_space<vmem>>, %arg2: memref<128x128xbf16, #tpu.memory_space<vmem>>, %arg3: memref<1x128xf32, #tpu.memory_space<vmem>>, %arg4: memref<128x128xbf16, #tpu.memory_space<vmem>>, %arg5: memref<1x128xf32, #tpu.memory_space<vmem>>, %arg6: memref<128x128xbf16, #tpu.memory_space<vmem>>, %arg7: memref<1x128xf32, #tpu.memory_space<vmem>>, %arg8: memref<128x128xf32, #tpu.memory_space<vmem>>) attributes {dimension_semantics = [], scalar_prefetch = 0 : i64, scratch_operands = 0 : i64, tpu.core_type = #tpu.core_type<tc>} {
    %c0 = arith.constant 0 : index
    %c0_0 = arith.constant 0 : index
    %0 = vector.load %arg0[%c0, %c0_0] : memref<128x128xbf16, #tpu.memory_space<vmem>>, vector<128x128xbf16>
    %c0_1 = arith.constant 0 : index
    %c0_2 = arith.constant 0 : index
    %1 = vector.load %arg1[%c0_1, %c0_2] : memref<128x128xbf16, #tpu.memory_space<vmem>>, vector<128x128xbf16>
    %c0_3 = arith.constant 0 : index
    %c0_4 = arith.constant 0 : index
    %2 = vector.load %arg2[%c0_3, %c0_4] : memref<128x128xbf16, #tpu.memory_space<vmem>>, vector<128x128xbf16>
    %c0_5 = arith.constant 0 : index
    %c0_6 = arith.constant 0 : index
    %3 = vector.load %arg3[%c0_5, %c0_6] : memref<1x128xf32, #tpu.memory_space<vmem>>, vector<1x128xf32>
    %cst = arith.constant dense<0.000000e+00> : vector<128x128xf32>
    %4 = tpu.matmul %0, %1, %cst {dimension_numbers = #tpu.dot_dimension_numbers<[1], [0], [0], [1], [0, 0, 1, 1], [], []>} : vector<128x128xbf16>, vector<128x128xbf16>, vector<128x128xf32> -> vector<128x128xf32>
    %5 = arith.truncf %4 : vector<128x128xf32> to vector<128x128xbf16>
    %cst_7 = arith.constant dense<0.000000e+00> : vector<128x128xf32>
    %6 = tpu.matmul %5, %2, %cst_7 {dimension_numbers = #tpu.dot_dimension_numbers<[1], [0], [0], [1], [0, 0, 1, 1], [], []>} : vector<128x128xbf16>, vector<128x128xbf16>, vector<128x128xf32> -> vector<128x128xf32>
    %7 = vector.broadcast %3 : vector<1x128xf32> to vector<128x128xf32>
    %8 = arith.addf %6, %7 : vector<128x128xf32>
    %cst_8 = arith.constant 0.000000e+00 : f32
    %9 = vector.broadcast %cst_8 : f32 to vector<128x128xf32>
    %10 = arith.maximumf %8, %9 : vector<128x128xf32>
    %11 = arith.truncf %10 : vector<128x128xf32> to vector<128x128xbf16>
    %c0_9 = arith.constant 0 : index
    %c0_10 = arith.constant 0 : index
    %12 = vector.load %arg4[%c0_9, %c0_10] : memref<128x128xbf16, #tpu.memory_space<vmem>>, vector<128x128xbf16>
    %c0_11 = arith.constant 0 : index
    %c0_12 = arith.constant 0 : index
    %13 = vector.load %arg5[%c0_11, %c0_12] : memref<1x128xf32, #tpu.memory_space<vmem>>, vector<1x128xf32>
    %cst_13 = arith.constant dense<0.000000e+00> : vector<128x128xf32>
    %14 = tpu.matmul %0, %11, %cst_13 {dimension_numbers = #tpu.dot_dimension_numbers<[1], [0], [0], [1], [0, 0, 1, 1], [], []>} : vector<128x128xbf16>, vector<128x128xbf16>, vector<128x128xf32> -> vector<128x128xf32>
    %15 = arith.truncf %14 : vector<128x128xf32> to vector<128x128xbf16>
    %cst_14 = arith.constant dense<0.000000e+00> : vector<128x128xf32>
    %16 = tpu.matmul %15, %12, %cst_14 {dimension_numbers = #tpu.dot_dimension_numbers<[1], [0], [0], [1], [0, 0, 1, 1], [], []>} : vector<128x128xbf16>, vector<128x128xbf16>, vector<128x128xf32> -> vector<128x128xf32>
    %17 = vector.broadcast %13 : vector<1x128xf32> to vector<128x128xf32>
    %18 = arith.addf %16, %17 : vector<128x128xf32>
    %cst_15 = arith.constant 0.000000e+00 : f32
    %19 = vector.broadcast %cst_15 : f32 to vector<128x128xf32>
    %20 = arith.maximumf %18, %19 : vector<128x128xf32>
    %21 = arith.truncf %20 : vector<128x128xf32> to vector<128x128xbf16>
    %c0_16 = arith.constant 0 : index
    %c0_17 = arith.constant 0 : index
    %22 = vector.load %arg6[%c0_16, %c0_17] : memref<128x128xbf16, #tpu.memory_space<vmem>>, vector<128x128xbf16>
    %c0_18 = arith.constant 0 : index
    %c0_19 = arith.constant 0 : index
    %23 = vector.load %arg7[%c0_18, %c0_19] : memref<1x128xf32, #tpu.memory_space<vmem>>, vector<1x128xf32>
    %cst_20 = arith.constant dense<0.000000e+00> : vector<128x128xf32>
    %24 = tpu.matmul %0, %21, %cst_20 {dimension_numbers = #tpu.dot_dimension_numbers<[1], [0], [0], [1], [0, 0, 1, 1], [], []>} : vector<128x128xbf16>, vector<128x128xbf16>, vector<128x128xf32> -> vector<128x128xf32>
    %25 = arith.truncf %24 : vector<128x128xf32> to vector<128x128xbf16>
    %cst_21 = arith.constant dense<0.000000e+00> : vector<128x128xf32>
    %26 = tpu.matmul %25, %22, %cst_21 {dimension_numbers = #tpu.dot_dimension_numbers<[1], [0], [0], [1], [0, 0, 1, 1], [], []>} : vector<128x128xbf16>, vector<128x128xbf16>, vector<128x128xf32> -> vector<128x128xf32>
    %27 = vector.broadcast %23 : vector<1x128xf32> to vector<128x128xf32>
    %28 = arith.addf %26, %27 : vector<128x128xf32>
    %29 = tpu.iota {dimensions = array<i32: 1>} : vector<128x128xi32>
    %c8_i32 = arith.constant 8 : i32
    %30 = vector.broadcast %c8_i32 : i32 to vector<128x128xi32>
    %31 = arith.cmpi slt, %29, %30 : vector<128x128xi32>
    %cst_22 = arith.constant -1.000000e+30 : f32
    %32 = vector.broadcast %cst_22 : f32 to vector<128x128xf32>
    %33 = arith.select %31, %28, %32 : vector<128x128xi1>, vector<128x128xf32>
    %cst_23 = arith.constant dense<0xFF800000> : vector<128xf32>
    %34 = vector.multi_reduction <maximumf>, %33, %cst_23 [1] : vector<128x128xf32> to vector<128xf32>
    %35 = vector.shape_cast %34 : vector<128xf32> to vector<128x1xf32>
    %36 = vector.broadcast %35 : vector<128x1xf32> to vector<128x128xf32>
    %37 = arith.subf %33, %36 : vector<128x128xf32>
    %38 = math.exp %37 : vector<128x128xf32>
    %cst_24 = arith.constant dense<0.000000e+00> : vector<128xf32>
    %39 = vector.multi_reduction <add>, %38, %cst_24 [1] : vector<128x128xf32> to vector<128xf32>
    %40 = vector.shape_cast %39 : vector<128xf32> to vector<128x1xf32>
    %41 = tpu.reciprocal %40 : vector<128x1xf32> -> vector<128x1xf32>
    %42 = vector.broadcast %41 : vector<128x1xf32> to vector<128x128xf32>
    %43 = arith.mulf %38, %42 : vector<128x128xf32>
    %c0_25 = arith.constant 0 : index
    %c0_26 = arith.constant 0 : index
    %44 = vector.load %arg8[%c0_25, %c0_26] : memref<128x128xf32, #tpu.memory_space<vmem>>, vector<128x128xf32>
    tpu.vector_store %arg8[%c0_25, %c0_26], %43 {strides = array<i32>} : memref<128x128xf32, #tpu.memory_space<vmem>>, vector<128x128xf32>,
    return
  }
}

</mosaic_0001>

<bundles_post_ra>
// kernel: tpu_custom_call.1
= control target key start
LH: loop header
LB: loop body
LE: loop exit
PB: predicated region body
PF: predicated region fallthrough
CT: control target
= control target key end

     0   :  { %13 = vsyncpa [#allocation3], 0  ;;  %s2225_s0 = inlined_call_operand.hbm [shape: bf16[128,128], index: 0, kind: input, shape index: {}]   ;;  %s2226_s1 = inlined_call_operand.hbm [shape: bf16[128,128], index: 1, kind: input, shape index: {}]   ;;  %s2227_s2 = inlined_call_operand.hbm [shape: bf16[128,128], index: 2, kind: input, shape index: {}]   ;;  %s2228_s3 = inlined_call_operand.vmem [shape: f32[1,128], index: 3, kind: input, shape index: {}]   ;;  %s2229_s4 = inlined_call_operand.hbm [shape: bf16[128,128], index: 4, kind: input, shape index: {}]   ;;  %s2230_s5 = inlined_call_operand.vmem [shape: f32[1,128], index: 5, kind: input, shape index: {}]   ;;  %s2231_s6 = inlined_call_operand.hbm [shape: bf16[128,128], index: 6, kind: input, shape index: {}]   ;;  %s2232_s7 = inlined_call_operand.vmem [shape: f32[1,128], index: 7, kind: input, shape index: {}]   ;;  %s2233_s8 = inlined_call_operand.hbm [shape: f32[128,128], index: 8, kind: output, shape index: {}]  }
   0x1   :  { %14 = vsyncpa [#allocation6], 0 }
   0x2   :  { %15 = vsyncpa [#allocation9], 0 }
   0x3   :  { %16 = vsyncpa [#allocation4], 0  ;;  %s1877_s27 = smov [#allocation5]   ;;  %s1878_s29 = smov [#allocation8]  }
   0x4   :  { %s34_s28 = sshll.u32 %s1877_s27, 4  ;;  %s60_s30 = sshll.u32 %s1878_s29, 4  ;;  %s35_s28 = int_to_ptr.vmem [resolvable:$true] %s34_s28  ;;  %s1932_s30 = int_to_ptr.vmem [resolvable:$true] %s60_s30 }
   0x5   :  { %s1737_s11 = scalar_lea.hbm %s2226_s1, 1024 }
   0x6   :  { %p1738_p0 = scmp.ne.s32.totalorder %s2226_s1, %s1737_s11  ;;  %p1741_p1 = scmp.lt.u32.totalorder %s1737_s11, %s2226_s1 }
   0x8   :  { %p1743_p2 = pnand %p1741_p1, %p1738_p0 }
   0xa   :  { %1746 = shalt.err (!%p1743_p2)
}
   0xb   :  { %s1747_s16 = scalar_lea.vmem %s35_s28, 1024  ;;  %p1752_p4 = scmp.lt.s32.totalorder %s35_s28, %s35_s28 }
   0xc   :  { %p1748_p3 = scmp.ne.s32.totalorder %s35_s28, %s1747_s16  ;;  %p1753_p5 = scmp.lt.s32.totalorder %s1747_s16, %s1747_s16 }
   0xe   :  { %p1754_p6 = por %p1753_p5, %p1752_p4 }
  0x10   :  { %p1755_p7 = pnand %p1754_p6, %p1748_p3 }
  0x12   :  { %1758 = shalt.err (!%p1755_p7)
}
  0x13   :  { %s1879_s17 = smov 64   ;;  %s1880_s18 = smov 4  }
  0x14   :  { %40 = dma.hbm_to_vmem [thread:$0]  %s2226_s1, 1024, %s35_s28, [#allocation6], %s1879_s17, %s1879_s17, %s1880_s18  }
  0x15   :  { %s1759_s23 = scalar_lea.hbm %s2229_s4, 1024 }
  0x16   :  { %p1760_p8 = scmp.ne.s32.totalorder %s2229_s4, %s1759_s23  ;;  %p1763_p9 = scmp.lt.u32.totalorder %s1759_s23, %s2229_s4 }
  0x18   :  { %p1765_p10 = pnand %p1763_p9, %p1760_p8 }
  0x1a   :  { %1768 = shalt.err (!%p1765_p10)
}
  0x1b   :  { %s1769_s29 = scalar_lea.vmem %s1932_s30, 1024  ;;  %p1774_p12 = scmp.lt.s32.totalorder %s1932_s30, %s1932_s30 }
  0x1c   :  { %p1770_p11 = scmp.ne.s32.totalorder %s1932_s30, %s1769_s29  ;;  %p1775_p13 = scmp.lt.s32.totalorder %s1769_s29, %s1769_s29 }
  0x1e   :  { %p1776_p0 = por %p1775_p13, %p1774_p12 }
  0x20   :  { %p1777_p1 = pnand %p1776_p0, %p1770_p11 }
  0x22   :  { %1780 = shalt.err (!%p1777_p1)
}
  0x23   :  { %66 = dma.hbm_to_vmem [thread:$0]  %s2229_s4, 1024, %s1932_s30, [#allocation9], %s1879_s17, %s1879_s17, %s1880_s18  }
  0x24   :  { %s1881_s9 = smov [#allocation2]   ;;  %s1882_s11 = smov [#allocation7]  }
  0x25   :  { %s22_s10 = sshll.u32 %s1881_s9, 4  ;;  %s46_s12 = sshll.u32 %s1882_s11, 4  ;;  %s23_s10 = int_to_ptr.vmem [resolvable:$true] %s22_s10  ;;  %s1969_s12 = int_to_ptr.vmem [resolvable:$true] %s46_s12 }
  0x26   :  { %s1781_s15 = scalar_lea.hbm %s2225_s0, 1024 }
  0x27   :  { %p1782_p2 = scmp.ne.s32.totalorder %s2225_s0, %s1781_s15  ;;  %p1785_p3 = scmp.lt.u32.totalorder %s1781_s15, %s2225_s0 }
  0x29   :  { %p1787_p4 = pnand %p1785_p3, %p1782_p2 }
  0x2b   :  { %1790 = shalt.err (!%p1787_p4)
}
  0x2c   :  { %s1791_s4 = scalar_lea.vmem %s23_s10, 1024  ;;  %p1796_p6 = scmp.lt.s32.totalorder %s23_s10, %s23_s10 }
  0x2d   :  { %p1792_p5 = scmp.ne.s32.totalorder %s23_s10, %s1791_s4  ;;  %p1797_p7 = scmp.lt.s32.totalorder %s1791_s4, %s1791_s4 }
  0x2f   :  { %p1798_p8 = por %p1797_p7, %p1796_p6 }
  0x31   :  { %p1799_p9 = pnand %p1798_p8, %p1792_p5 }
  0x33   :  { %1802 = shalt.err (!%p1799_p9)
}
  0x34   :  { %28 = dma.hbm_to_vmem [thread:$0]  %s2225_s0, 1024, %s23_s10, [#allocation3], %s1879_s17, %s1879_s17, %s1880_s18  }
  0x35   :  { %s1803_s25 = scalar_lea.hbm %s2227_s2, 1024 }
  0x36   :  { %p1804_p10 = scmp.ne.s32.totalorder %s2227_s2, %s1803_s25  ;;  %p1807_p11 = scmp.lt.u32.totalorder %s1803_s25, %s2227_s2 }
  0x38   :  { %p1809_p12 = pnand %p1807_p11, %p1804_p10 }
  0x3a   :  { %1812 = shalt.err (!%p1809_p12)
}
  0x3b   :  { %s1813_s28 = scalar_lea.vmem %s1969_s12, 1024  ;;  %p1818_p0 = scmp.lt.s32.totalorder %s1969_s12, %s1969_s12 }
  0x3c   :  { %p1814_p13 = scmp.ne.s32.totalorder %s1969_s12, %s1813_s28  ;;  %p1819_p1 = scmp.lt.s32.totalorder %s1813_s28, %s1813_s28 }
  0x3e   :  { %p1820_p2 = por %p1819_p1, %p1818_p0 }
  0x40   :  { %p1821_p3 = pnand %p1820_p2, %p1814_p13 }
  0x42   :  { %1824 = shalt.err (!%p1821_p3)
}
  0x43   :  { %52 = dma.hbm_to_vmem [thread:$0]  %s2227_s2, 1024, %s1969_s12, [#allocation6], %s1879_s17, %s1879_s17, %s1880_s18  }
  0x44   :  { %s1883_s10 = smov [#allocation10]   ;;  %s1825_s15 = scalar_lea.hbm %s2231_s6, 1024 }
  0x45   :  { %s74_s11 = sshll.u32 %s1883_s10, 4  ;;  %p1826_p4 = scmp.ne.s32.totalorder %s2231_s6, %s1825_s15  ;;  %s75_s11 = int_to_ptr.vmem [resolvable:$true] %s74_s11 }
  0x46   :  { %p1829_p5 = scmp.lt.u32.totalorder %s1825_s15, %s2231_s6 }
  0x48   :  { %p1831_p6 = pnand %p1829_p5, %p1826_p4 }
  0x4a   :  { %1834 = shalt.err (!%p1831_p6)
}
  0x4b   :  { %s1835_s4 = scalar_lea.vmem %s75_s11, 1024  ;;  %p1840_p8 = scmp.lt.s32.totalorder %s75_s11, %s75_s11 }
  0x4c   :  { %p1836_p7 = scmp.ne.s32.totalorder %s75_s11, %s1835_s4  ;;  %p1841_p9 = scmp.lt.s32.totalorder %s1835_s4, %s1835_s4 }
  0x4e   :  { %p1842_p10 = por %p1841_p9, %p1840_p8 }
  0x50   :  { %p1843_p11 = pnand %p1842_p10, %p1836_p7 }
  0x52   :  { %1846 = shalt.err (!%p1843_p11)
}
  0x53   :  { %80 = dma.hbm_to_vmem [thread:$0]  %s2231_s6, 1024, %s75_s11, [#allocation9], %s1879_s17, %s1879_s17, %s1880_s18  }
  0x54   :  { %1869 = dma.done.wait [#allocation3], 1024  }
  0x55   :  { %1870 = vsyncadd [#allocation3], 4294966272 }
  0x56   :  { %1871 = dma.done.wait [#allocation6], 2048  }
  0x57   :  { %1872 = vsyncadd [#allocation6], 4294965248 }
  0x58   :  { %1873 = dma.done.wait [#allocation9], 2048  }
  0x59   :  { %1874 = vsyncadd [#allocation9], 4294965248  ;;  %v1633_v0 = vld [vmem:[#allocation5] sm:$0xff]   ;;  %v1634_v1 = vld [vmem:[#allocation5 + $0x8] sm:$0xff]  }
  0x5a   :  { %1431 = vmatprep.subr.bf16.mxu0 %v1633_v0  ;;  %v1635_v2 = vld [vmem:[#allocation5 + $0x10] sm:$0xff]   ;;  %v1636_v3 = vld [vmem:[#allocation5 + $0x18] sm:$0xff]   ;;  %v2021_v4 = vld [vmem:[#allocation2] sm:$0xff]  }
  0x5b   :  { %1432 = vmatpush3.bf16.msra.mxu0 %v1633_v0  ;;  %1447 = vmatprep.mubr.bf16.mxu0 %v2021_v4  ;;  %v1637_v5 = vld [vmem:[#allocation5 + $0x20] sm:$0xff]   ;;  %v1638_v6 = vld [vmem:[#allocation5 + $0x28] sm:$0xff]   ;;  %v1639_v9 = vld [vmem:[#allocation5 + $0x30] sm:$0xff]  }
  0x5c   :  { %1433 = vmatprep.subr.bf16.mxu0 %v1634_v1  ;;  %v1649_v7 = vld [vmem:[#allocation7] sm:$0xff]   ;;  %v1650_v8 = vld [vmem:[#allocation7 + $0x8] sm:$0xff]   ;;  %v1651_v10 = vld [vmem:[#allocation7 + $0x10] sm:$0xff]  }
  0x5d   :  { %1463 = vmatprep.subr.bf16.mxu1 %v1649_v7  ;;  %v1640_v11 = vld [vmem:[#allocation5 + $0x38] sm:$0xff]   ;;  %v1653_v13 = vld [vmem:[#allocation7 + $0x20] sm:$0xff]   ;;  %v2024_v14 = vld [vmem:[#allocation2 + $0x8] sm:$0xff]  }
  0x5e   :  { %1464 = vmatpush3.bf16.msra.mxu1 %v1649_v7  ;;  %v1652_v12 = vld [vmem:[#allocation7 + $0x18] sm:$0xff]   ;;  %v2026_v15 = vld [vmem:[#allocation2 + $0x10] sm:$0xff]   ;;  %v1654_v16 = vld [vmem:[#allocation7 + $0x28] sm:$0xff]  }
  0x5f   :  { %1434 = vmatpush3.bf16.msra.mxu0 %v1634_v1  ;;  %1465 = vmatprep.subr.bf16.mxu1 %v1650_v8  ;;  %v1655_v17 = vld [vmem:[#allocation7 + $0x30] sm:$0xff]   ;;  %v2030_v18 = vld [vmem:[#allocation2 + $0x18] sm:$0xff]   ;;  %v2032_v19 = vld [vmem:[#allocation2 + $0x20] sm:$0xff]  }
  0x60   :  { %1435 = vmatprep.subr.bf16.mxu0 %v1635_v2  ;;  %v2036_v20 = vld [vmem:[#allocation2 + $0x28] sm:$0xff]   ;;  %v2038_v21 = vld [vmem:[#allocation2 + $0x30] sm:$0xff]   ;;  %v2042_v22 = vld [vmem:[#allocation2 + $0x38] sm:$0xff]  }
  0x61   :  { %v1656_v23 = vld [vmem:[#allocation7 + $0x38] sm:$0xff]   ;;  %v1657_v48 = vld [vmem:[#allocation8] sm:$0xff]   ;;  %v1658_v49 = vld [vmem:[#allocation8 + $0x8] sm:$0xff]  }
  0x62   :  { %1466 = vmatpush3.bf16.msra.mxu1 %v1650_v8  ;;  %v1659_v50 = vld [vmem:[#allocation8 + $0x10] sm:$0xff]   ;;  %v1660_v51 = vld [vmem:[#allocation8 + $0x18] sm:$0xff]   ;;  %v1661_v52 = vld [vmem:[#allocation8 + $0x20] sm:$0xff]  }
  0x63   :  { %1436 = vmatpush3.bf16.msra.mxu0 %v1635_v2  ;;  %1467 = vmatprep.subr.bf16.mxu1 %v1651_v10  ;;  %v1662_v53 = vld [vmem:[#allocation8 + $0x28] sm:$0xff]   ;;  %v1663_v54 = vld [vmem:[#allocation8 + $0x30] sm:$0xff]   ;;  %v1308_v55 = vld [vmem:[%s2228_s3] ss:$0 sm:$0xff] }
  0x64   :  { %1437 = vmatprep.subr.bf16.mxu0 %v1636_v3 }
  0x66   :  { %1468 = vmatpush3.bf16.msra.mxu1 %v1651_v10 }
  0x67   :  { %1438 = vmatpush3.bf16.msra.mxu0 %v1636_v3  ;;  %1469 = vmatprep.subr.bf16.mxu1 %v1652_v12 }
  0x68   :  { %1439 = vmatprep.subr.bf16.mxu0 %v1637_v5 }
  0x6a   :  { %1470 = vmatpush3.bf16.msra.mxu1 %v1652_v12 }
  0x6b   :  { %1440 = vmatpush3.bf16.msra.mxu0 %v1637_v5  ;;  %1471 = vmatprep.subr.bf16.mxu1 %v1653_v13 }
  0x6c   :  { %1441 = vmatprep.subr.bf16.mxu0 %v1638_v6 }
  0x6e   :  { %1472 = vmatpush3.bf16.msra.mxu1 %v1653_v13 }
  0x6f   :  { %1442 = vmatpush3.bf16.msra.mxu0 %v1638_v6  ;;  %1473 = vmatprep.subr.bf16.mxu1 %v1654_v16 }
  0x70   :  { %1443 = vmatprep.subr.bf16.mxu0 %v1639_v9 }
  0x72   :  { %1474 = vmatpush3.bf16.msra.mxu1 %v1654_v16 }
  0x73   :  { %1444 = vmatpush3.bf16.msra.mxu0 %v1639_v9  ;;  %1475 = vmatprep.subr.bf16.mxu1 %v1655_v17 }
  0x74   :  { %1445 = vmatprep.subr.bf16.mxu0 %v1640_v11 }
  0x76   :  { %1476 = vmatpush3.bf16.msra.mxu1 %v1655_v17 }
  0x77   :  { %1446 = vmatpush3.bf16.msra.mxu0 %v1640_v11  ;;  %1477 = vmatprep.subr.bf16.mxu1 %v1656_v23 }
  0x7a   :  { %1448 = vmatmul.mubr.bf16.vlgmr.msra.gmra.mrb[0].mxu0 %v2024_v14  ;;  %1478 = vmatpush3.bf16.msra.mxu1 %v1656_v23 }
  0x7b   :  { %1451 = vmatprep.mubr.bf16.mxu0 %v2026_v15  ;;  %1527 = vmatprep.subr.bf16.mxu1 %v1657_v48 }
  0x82   :  { %1452 = vmatmul.mubr.bf16.gmra.mrb[4].mxu0 %v2030_v18 }
  0x83   :  { %1455 = vmatprep.mubr.bf16.mxu0 %v2032_v19 }
  0x8a   :  { %1456 = vmatmul.mubr.bf16.gmra.mrb[8].mxu0 %v2036_v20 }
  0x8b   :  { %1459 = vmatprep.mubr.bf16.mxu0 %v2038_v21 }
  0x92   :  { %1460 = vmatmul.mubr.bf16.gmra.mrb[12].mxu0 %v2042_v22 }
  0x93   :  { %1511 = vmatprep.mubr.bf16.mxu0 %v2021_v4 }
 0x14d   :  { %v1449_v24 = vpop.f32.mrb[0].mxu0 }
 0x14e   :  { %v278_v25 = vpop.f32.mrb[1].mxu0 }
 0x14f   :  { %v1450_v26 = vpop.f32.mrb[2].mxu0 }
 0x150   :  { %v342_v27 = vpack.c.bf16 %v1450_v26, %v1449_v24  ;;  %v281_v28 = vpop.f32.mrb[3].mxu0 }
 0x151   :  { %v341_v29 = vpack.c.bf16 %v281_v28, %v278_v25 }
 0x153   :  { %1479 = vmatprep.mubr.bf16.mxu1 %v341_v29 }
 0x154   :  { %1480 = vmatmul.mubr.bf16.vlgmr.msra.gmra.mrb[0].mxu1 %v342_v27 }
 0x155   :  { %v1453_v30 = vpop.f32.mrb[4].mxu0  ;;  %1528 = vmatpush3.bf16.msra.mxu1 %v1657_v48 }
 0x156   :  { %v294_v31 = vpop.f32.mrb[5].mxu0  ;;  %1529 = vmatprep.subr.bf16.mxu1 %v1658_v49 }
 0x157   :  { %v1454_v32 = vpop.f32.mrb[6].mxu0 }
 0x158   :  { %v344_v33 = vpack.c.bf16 %v1454_v32, %v1453_v30  ;;  %v297_v34 = vpop.f32.mrb[7].mxu0 }
 0x159   :  { %v343_v35 = vpack.c.bf16 %v297_v34, %v294_v31  ;;  %1530 = vmatpush3.bf16.msra.mxu1 %v1658_v49 }
 0x15a   :  { %1531 = vmatprep.subr.bf16.mxu1 %v1659_v50 }
 0x15b   :  { %1483 = vmatprep.mubr.bf16.mxu1 %v343_v35 }
 0x15c   :  { %1484 = vmatmul.mubr.bf16.gmra.mrb[4].mxu1 %v344_v33 }
 0x15d   :  { %v1457_v36 = vpop.f32.mrb[8].mxu0  ;;  %1532 = vmatpush3.bf16.msra.mxu1 %v1659_v50 }
 0x15e   :  { %v310_v37 = vpop.f32.mrb[9].mxu0  ;;  %1533 = vmatprep.subr.bf16.mxu1 %v1660_v51 }
 0x15f   :  { %v1458_v38 = vpop.f32.mrb[10].mxu0 }
 0x160   :  { %v346_v39 = vpack.c.bf16 %v1458_v38, %v1457_v36  ;;  %v313_v40 = vpop.f32.mrb[11].mxu0 }
 0x161   :  { %v345_v41 = vpack.c.bf16 %v313_v40, %v310_v37  ;;  %1534 = vmatpush3.bf16.msra.mxu1 %v1660_v51 }
 0x162   :  { %1535 = vmatprep.subr.bf16.mxu1 %v1661_v52 }
 0x163   :  { %1487 = vmatprep.mubr.bf16.mxu1 %v345_v41 }
 0x164   :  { %1488 = vmatmul.mubr.bf16.gmra.mrb[8].mxu1 %v346_v39 }
 0x165   :  { %v1461_v42 = vpop.f32.mrb[12].mxu0  ;;  %1536 = vmatpush3.bf16.msra.mxu1 %v1661_v52 }
 0x166   :  { %v326_v43 = vpop.f32.mrb[13].mxu0  ;;  %1537 = vmatprep.subr.bf16.mxu1 %v1662_v53 }
 0x167   :  { %v1462_v44 = vpop.f32.mrb[14].mxu0 }
 0x168   :  { %v348_v45 = vpack.c.bf16 %v1462_v44, %v1461_v42  ;;  %v329_v46 = vpop.f32.mrb[15].mxu0 }
 0x169   :  { %v347_v47 = vpack.c.bf16 %v329_v46, %v326_v43  ;;  %1538 = vmatpush3.bf16.msra.mxu1 %v1662_v53 }
 0x16a   :  { %1539 = vmatprep.subr.bf16.mxu1 %v1663_v54 }
 0x16b   :  { %1491 = vmatprep.mubr.bf16.mxu1 %v347_v47 }
 0x16c   :  { %1492 = vmatmul.mubr.bf16.gmra.mrb[12].mxu1 %v348_v45 }
 0x16d   :  { %1540 = vmatpush3.bf16.msra.mxu1 %v1663_v54 }
 0x227   :  { %v1481_v56 = vpop.f32.mrb[0].mxu1 }
 0x228   :  { %v446_v57 = vadd.f32 %v1481_v56, %v1308_v55  ;;  %v437_v58 = vpop.f32.mrb[1].mxu1 }
 0x229   :  { %v438_v59 = vadd.f32 %v1308_v55, %v437_v58  ;;  %v1482_v60 = vpop.f32.mrb[2].mxu1 }
 0x22a   :  { %v449_v61 = vadd.f32 %v1482_v60, %v1308_v55  ;;  %v440_v62 = vpop.f32.mrb[3].mxu1  ;;  %v502_v0 = vmax.f32 %v446_v57, 0.0 }
 0x22b   :  { %v441_v63 = vadd.f32 %v1308_v55, %v440_v62  ;;  %v500_v2 = vmax.f32 %v438_v59, 0.0 }
 0x22c   :  { %v503_v1 = vmax.f32 %v449_v61, 0.0 }
 0x22d   :  { %v501_v3 = vmax.f32 %v441_v63, 0.0 }
 0x22e   :  { %v517_v5 = vpack.c.bf16 %v503_v1, %v502_v0 }
 0x22f   :  { %v516_v6 = vpack.c.bf16 %v501_v3, %v500_v2  ;;  %v1485_v7 = vpop.f32.mrb[4].mxu1 }
 0x230   :  { %v462_v8 = vadd.f32 %v1485_v7, %v1308_v55  ;;  %v453_v9 = vpop.f32.mrb[5].mxu1 }
 0x231   :  { %v454_v10 = vadd.f32 %v1308_v55, %v453_v9  ;;  %v1486_v11 = vpop.f32.mrb[6].mxu1  ;;  %1495 = vmatprep.subr.bf16.mxu0 %v516_v6 }
 0x232   :  { %v465_v12 = vadd.f32 %v1486_v11, %v1308_v55  ;;  %v456_v13 = vpop.f32.mrb[7].mxu1  ;;  %1496 = vmatpush3.bf16.msra.mxu0 %v516_v6  ;;  %v506_v17 = vmax.f32 %v462_v8, 0.0 }
 0x233   :  { %v457_v16 = vadd.f32 %v1308_v55, %v456_v13  ;;  %1497 = vmatprep.subr.bf16.mxu0 %v517_v5  ;;  %v504_v24 = vmax.f32 %v454_v10, 0.0 }
 0x234   :  { %v507_v23 = vmax.f32 %v465_v12, 0.0 }
 0x235   :  { %v505_v25 = vmax.f32 %v457_v16, 0.0 }
 0x236   :  { %v519_v26 = vpack.c.bf16 %v507_v23, %v506_v17  ;;  %1498 = vmatpush3.bf16.msra.mxu0 %v517_v5 }
 0x237   :  { %v518_v27 = vpack.c.bf16 %v505_v25, %v504_v24  ;;  %v1489_v28 = vpop.f32.mrb[8].mxu1  ;;  %v1665_v24 = vld [vmem:[#allocation10] sm:$0xff]   ;;  %v1666_v25 = vld [vmem:[#allocation10 + $0x8] sm:$0xff]  }
 0x238   :  { %v478_v29 = vadd.f32 %v1489_v28, %v1308_v55  ;;  %v469_v30 = vpop.f32.mrb[9].mxu1  ;;  %v1669_v28 = vld [vmem:[#allocation10 + $0x20] sm:$0xff]  }
 0x239   :  { %v470_v31 = vadd.f32 %v1308_v55, %v469_v30  ;;  %v1490_v32 = vpop.f32.mrb[10].mxu1  ;;  %1499 = vmatprep.subr.bf16.mxu0 %v518_v27  ;;  %v1671_v30 = vld [vmem:[#allocation10 + $0x30] sm:$0xff]  }
 0x23a   :  { %v481_v33 = vadd.f32 %v1490_v32, %v1308_v55  ;;  %v472_v34 = vpop.f32.mrb[11].mxu1  ;;  %1500 = vmatpush3.bf16.msra.mxu0 %v518_v27  ;;  %v510_v36 = vmax.f32 %v478_v29, 0.0  ;;  %v1668_v27 = vld [vmem:[#allocation10 + $0x18] sm:$0xff]   ;;  %v1670_v29 = vld [vmem:[#allocation10 + $0x28] sm:$0xff]  }
 0x23b   :  { %v473_v35 = vadd.f32 %v1308_v55, %v472_v34  ;;  %1501 = vmatprep.subr.bf16.mxu0 %v519_v26  ;;  %v508_v38 = vmax.f32 %v470_v31, 0.0  ;;  %v1317_v31 = vld [vmem:[%s2230_s5] ss:$0 sm:$0xff] }
 0x23c   :  { %v511_v37 = vmax.f32 %v481_v33, 0.0 }
 0x23d   :  { %v509_v39 = vmax.f32 %v473_v35, 0.0 }
 0x23e   :  { %v521_v40 = vpack.c.bf16 %v511_v37, %v510_v36  ;;  %1502 = vmatpush3.bf16.msra.mxu0 %v519_v26  ;;  %v1667_v26 = vld [vmem:[#allocation10 + $0x10] sm:$0xff]  }
 0x23f   :  { %v520_v41 = vpack.c.bf16 %v509_v39, %v508_v38  ;;  %v1493_v42 = vpop.f32.mrb[12].mxu1 }
 0x240   :  { %v494_v43 = vadd.f32 %v1493_v42, %v1308_v55  ;;  %v485_v44 = vpop.f32.mrb[13].mxu1 }
 0x241   :  { %v486_v45 = vadd.f32 %v1308_v55, %v485_v44  ;;  %v1494_v46 = vpop.f32.mrb[14].mxu1  ;;  %1503 = vmatprep.subr.bf16.mxu0 %v520_v41 }
 0x242   :  { %v497_v47 = vadd.f32 %v1494_v46, %v1308_v55  ;;  %v488_v48 = vpop.f32.mrb[15].mxu1  ;;  %1504 = vmatpush3.bf16.msra.mxu0 %v520_v41  ;;  %v514_v50 = vmax.f32 %v494_v43, 0.0 }
 0x243   :  { %v489_v49 = vadd.f32 %v1308_v55, %v488_v48  ;;  %1505 = vmatprep.subr.bf16.mxu0 %v521_v40  ;;  %v512_v52 = vmax.f32 %v486_v45, 0.0  ;;  %v1664_v55 = vld [vmem:[#allocation8 + $0x38] sm:$0xff]  }
 0x244   :  { %v515_v51 = vmax.f32 %v497_v47, 0.0  ;;  %1541 = vmatprep.subr.bf16.mxu1 %v1664_v55 }
 0x245   :  { %v513_v53 = vmax.f32 %v489_v49, 0.0  ;;  %1542 = vmatpush3.bf16.msra.mxu1 %v1664_v55 }
 0x246   :  { %v523_v54 = vpack.c.bf16 %v515_v51, %v514_v50  ;;  %1506 = vmatpush3.bf16.msra.mxu0 %v521_v40  ;;  %1591 = vmatprep.subr.bf16.mxu1 %v1665_v24 }
 0x247   :  { %v522_v56 = vpack.c.bf16 %v513_v53, %v512_v52 }
 0x249   :  { %1507 = vmatprep.subr.bf16.mxu0 %v522_v56 }
 0x24a   :  { %1508 = vmatpush3.bf16.msra.mxu0 %v522_v56 }
 0x24b   :  { %1509 = vmatprep.subr.bf16.mxu0 %v523_v54 }
 0x24e   :  { %1510 = vmatpush3.bf16.msra.mxu0 %v523_v54 }
 0x251   :  { %1512 = vmatmul.mubr.bf16.vlgmr.msra.gmra.mrb[16].mxu0 %v2024_v14 }
 0x252   :  { %1515 = vmatprep.mubr.bf16.mxu0 %v2026_v15 }
 0x259   :  { %1516 = vmatmul.mubr.bf16.gmra.mrb[20].mxu0 %v2030_v18 }
 0x25a   :  { %1519 = vmatprep.mubr.bf16.mxu0 %v2032_v19 }
 0x261   :  { %1520 = vmatmul.mubr.bf16.gmra.mrb[24].mxu0 %v2036_v20 }
 0x262   :  { %1523 = vmatprep.mubr.bf16.mxu0 %v2038_v21 }
 0x269   :  { %1524 = vmatmul.mubr.bf16.gmra.mrb[28].mxu0 %v2042_v22 }
 0x26a   :  { %1575 = vmatprep.mubr.bf16.mxu0 %v2021_v4 }
 0x324   :  { %v1513_v57 = vpop.f32.mrb[16].mxu0 }
 0x325   :  { %v575_v58 = vpop.f32.mrb[17].mxu0 }
 0x326   :  { %v1514_v59 = vpop.f32.mrb[18].mxu0 }
 0x327   :  { %v639_v60 = vpack.c.bf16 %v1514_v59, %v1513_v57  ;;  %v578_v61 = vpop.f32.mrb[19].mxu0 }
 0x328   :  { %v638_v62 = vpack.c.bf16 %v578_v61, %v575_v58 }
 0x32a   :  { %1543 = vmatprep.mubr.bf16.mxu1 %v638_v62 }
 0x32b   :  { %1544 = vmatmul.mubr.bf16.vlgmr.msra.gmra.mrb[16].mxu1 %v639_v60 }
 0x32c   :  { %v1517_v63 = vpop.f32.mrb[20].mxu0  ;;  %1592 = vmatpush3.bf16.msra.mxu1 %v1665_v24 }
 0x32d   :  { %v591_v0 = vpop.f32.mrb[21].mxu0  ;;  %1593 = vmatprep.subr.bf16.mxu1 %v1666_v25 }
 0x32e   :  { %v1518_v1 = vpop.f32.mrb[22].mxu0 }
 0x32f   :  { %v641_v2 = vpack.c.bf16 %v1518_v1, %v1517_v63  ;;  %v594_v3 = vpop.f32.mrb[23].mxu0 }
 0x330   :  { %v640_v5 = vpack.c.bf16 %v594_v3, %v591_v0  ;;  %1594 = vmatpush3.bf16.msra.mxu1 %v1666_v25 }
 0x331   :  { %1595 = vmatprep.subr.bf16.mxu1 %v1667_v26 }
 0x332   :  { %1547 = vmatprep.mubr.bf16.mxu1 %v640_v5 }
 0x333   :  { %1548 = vmatmul.mubr.bf16.gmra.mrb[20].mxu1 %v641_v2 }
 0x334   :  { %v1521_v4 = vpop.f32.mrb[24].mxu0  ;;  %1596 = vmatpush3.bf16.msra.mxu1 %v1667_v26 }
 0x335   :  { %v607_v6 = vpop.f32.mrb[25].mxu0  ;;  %1597 = vmatprep.subr.bf16.mxu1 %v1668_v27 }
 0x336   :  { %v1522_v7 = vpop.f32.mrb[26].mxu0 }
 0x337   :  { %v643_v8 = vpack.c.bf16 %v1522_v7, %v1521_v4  ;;  %v610_v9 = vpop.f32.mrb[27].mxu0 }
 0x338   :  { %v642_v10 = vpack.c.bf16 %v610_v9, %v607_v6  ;;  %1598 = vmatpush3.bf16.msra.mxu1 %v1668_v27 }
 0x339   :  { %1599 = vmatprep.subr.bf16.mxu1 %v1669_v28 }
 0x33a   :  { %1551 = vmatprep.mubr.bf16.mxu1 %v642_v10 }
 0x33b   :  { %1552 = vmatmul.mubr.bf16.gmra.mrb[24].mxu1 %v643_v8 }
 0x33c   :  { %v1525_v11 = vpop.f32.mrb[28].mxu0  ;;  %1600 = vmatpush3.bf16.msra.mxu1 %v1669_v28 }
 0x33d   :  { %v623_v12 = vpop.f32.mrb[29].mxu0  ;;  %1601 = vmatprep.subr.bf16.mxu1 %v1670_v29 }
 0x33e   :  { %v1526_v13 = vpop.f32.mrb[30].mxu0 }
 0x33f   :  { %v645_v16 = vpack.c.bf16 %v1526_v13, %v1525_v11  ;;  %v626_v17 = vpop.f32.mrb[31].mxu0 }
 0x340   :  { %v644_v23 = vpack.c.bf16 %v626_v17, %v623_v12  ;;  %1602 = vmatpush3.bf16.msra.mxu1 %v1670_v29 }
 0x341   :  { %1603 = vmatprep.subr.bf16.mxu1 %v1671_v30 }
 0x342   :  { %1555 = vmatprep.mubr.bf16.mxu1 %v644_v23 }
 0x343   :  { %1556 = vmatmul.mubr.bf16.gmra.mrb[28].mxu1 %v645_v16 }
 0x344   :  { %1604 = vmatpush3.bf16.msra.mxu1 %v1671_v30 }
 0x3fe   :  { %v1545_v32 = vpop.f32.mrb[16].mxu1 }
 0x3ff   :  { %v743_v33 = vadd.f32 %v1545_v32, %v1317_v31  ;;  %v734_v34 = vpop.f32.mrb[17].mxu1 }
 0x400   :  { %v735_v35 = vadd.f32 %v1317_v31, %v734_v34  ;;  %v1546_v36 = vpop.f32.mrb[18].mxu1 }
 0x401   :  { %v746_v37 = vadd.f32 %v1546_v36, %v1317_v31  ;;  %v737_v38 = vpop.f32.mrb[19].mxu1  ;;  %v799_v40 = vmax.f32 %v743_v33, 0.0 }
 0x402   :  { %v738_v39 = vadd.f32 %v1317_v31, %v737_v38  ;;  %v797_v42 = vmax.f32 %v735_v35, 0.0 }
 0x403   :  { %v800_v41 = vmax.f32 %v746_v37, 0.0 }
 0x404   :  { %v798_v43 = vmax.f32 %v738_v39, 0.0 }
 0x405   :  { %v814_v44 = vpack.c.bf16 %v800_v41, %v799_v40 }
 0x406   :  { %v813_v45 = vpack.c.bf16 %v798_v43, %v797_v42  ;;  %v1549_v46 = vpop.f32.mrb[20].mxu1 }
 0x407   :  { %v759_v47 = vadd.f32 %v1549_v46, %v1317_v31  ;;  %v750_v48 = vpop.f32.mrb[21].mxu1 }
 0x408   :  { %v751_v49 = vadd.f32 %v1317_v31, %v750_v48  ;;  %v1550_v50 = vpop.f32.mrb[22].mxu1  ;;  %1559 = vmatprep.subr.bf16.mxu0 %v813_v45 }
 0x409   :  { %v762_v51 = vadd.f32 %v1550_v50, %v1317_v31  ;;  %v753_v52 = vpop.f32.mrb[23].mxu1  ;;  %1560 = vmatpush3.bf16.msra.mxu0 %v813_v45  ;;  %v803_v54 = vmax.f32 %v759_v47, 0.0 }
 0x40a   :  { %v754_v53 = vadd.f32 %v1317_v31, %v753_v52  ;;  %1561 = vmatprep.subr.bf16.mxu0 %v814_v44  ;;  %v801_v55 = vmax.f32 %v751_v49, 0.0  ;;  %v1094_v49 = vlaneseq }
 0x40b   :  { %v804_v56 = vmax.f32 %v762_v51, 0.0  ;;  %v1326_v51 = vld [vmem:[%s2232_s7] ss:$0 sm:$0xff]  ;;  %s1884_s7 = smov [#allocation11]  }
 0x40c   :  { %v802_v57 = vmax.f32 %v754_v53, 0.0  ;;  %v2067_v50 = vand.u32 127, %v1094_v49  ;;  %s1278_s22 = sshll.u32 %s1884_s7, 4  ;;  %s1279_s22 = int_to_ptr.vmem [resolvable:$true] %s1278_s22 }
 0x40d   :  { %v816_v58 = vpack.c.bf16 %v804_v56, %v803_v54  ;;  %1562 = vmatpush3.bf16.msra.mxu0 %v814_v44  ;;  %s1847_s23 = scalar_lea.vmem %s1279_s22, 2048  ;;  %p1852_p13 = scmp.lt.s32.totalorder %s1279_s22, %s1279_s22 }
 0x40e   :  { %v815_v59 = vpack.c.bf16 %v802_v57, %v801_v55  ;;  %v1553_v60 = vpop.f32.mrb[24].mxu1  ;;  %vm1096_vm0 = vcmp.lt.s32.totalorder %v2067_v50, 8  ;;  %p1848_p12 = scmp.ne.s32.totalorder %s1279_s22, %s1847_s23  ;;  %p1853_p0 = scmp.lt.s32.totalorder %s1847_s23, %s1847_s23 }
 0x40f   :  { %v775_v61 = vadd.f32 %v1553_v60, %v1317_v31  ;;  %v766_v62 = vpop.f32.mrb[25].mxu1 }
 0x410   :  { %v767_v63 = vadd.f32 %v1317_v31, %v766_v62  ;;  %v1554_v0 = vpop.f32.mrb[26].mxu1  ;;  %1563 = vmatprep.subr.bf16.mxu0 %v815_v59  ;;  %p1854_p1 = por %p1853_p0, %p1852_p13 }
 0x411   :  { %v778_v1 = vadd.f32 %v1554_v0, %v1317_v31  ;;  %v769_v2 = vpop.f32.mrb[27].mxu1  ;;  %1564 = vmatpush3.bf16.msra.mxu0 %v815_v59  ;;  %v807_v5 = vmax.f32 %v775_v61, 0.0 }
 0x412   :  { %v770_v3 = vadd.f32 %v1317_v31, %v769_v2  ;;  %1565 = vmatprep.subr.bf16.mxu0 %v816_v58  ;;  %v805_v6 = vmax.f32 %v767_v63, 0.0  ;;  %p1855_p2 = pnand %p1854_p1, %p1848_p12 }
 0x413   :  { %v808_v4 = vmax.f32 %v778_v1, 0.0 }
 0x414   :  { %v806_v7 = vmax.f32 %v770_v3, 0.0 }
 0x415   :  { %v818_v8 = vpack.c.bf16 %v808_v4, %v807_v5  ;;  %1566 = vmatpush3.bf16.msra.mxu0 %v816_v58 }
 0x416   :  { %v817_v9 = vpack.c.bf16 %v806_v7, %v805_v6  ;;  %v1557_v10 = vpop.f32.mrb[28].mxu1 }
 0x417   :  { %v791_v11 = vadd.f32 %v1557_v10, %v1317_v31  ;;  %v782_v12 = vpop.f32.mrb[29].mxu1 }
 0x418   :  { %v783_v13 = vadd.f32 %v1317_v31, %v782_v12  ;;  %v1558_v16 = vpop.f32.mrb[30].mxu1  ;;  %1567 = vmatprep.subr.bf16.mxu0 %v817_v9 }
 0x419   :  { %v794_v17 = vadd.f32 %v1558_v16, %v1317_v31  ;;  %v785_v23 = vpop.f32.mrb[31].mxu1  ;;  %1568 = vmatpush3.bf16.msra.mxu0 %v817_v9  ;;  %v811_v25 = vmax.f32 %v791_v11, 0.0 }
 0x41a   :  { %v786_v24 = vadd.f32 %v1317_v31, %v785_v23  ;;  %1569 = vmatprep.subr.bf16.mxu0 %v818_v8  ;;  %v809_v27 = vmax.f32 %v783_v13, 0.0  ;;  %v1672_v31 = vld [vmem:[#allocation10 + $0x38] sm:$0xff]  }
 0x41b   :  { %v812_v26 = vmax.f32 %v794_v17, 0.0  ;;  %1605 = vmatprep.subr.bf16.mxu1 %v1672_v31 }
 0x41c   :  { %v810_v28 = vmax.f32 %v786_v24, 0.0  ;;  %1606 = vmatpush3.bf16.msra.mxu1 %v1672_v31 }
 0x41d   :  { %v820_v29 = vpack.c.bf16 %v812_v26, %v811_v25  ;;  %1570 = vmatpush3.bf16.msra.mxu0 %v818_v8 }
 0x41e   :  { %v819_v30 = vpack.c.bf16 %v810_v28, %v809_v27 }
 0x420   :  { %1571 = vmatprep.subr.bf16.mxu0 %v819_v30 }
 0x421   :  { %1572 = vmatpush3.bf16.msra.mxu0 %v819_v30 }
 0x422   :  { %1573 = vmatprep.subr.bf16.mxu0 %v820_v29 }
 0x425   :  { %1574 = vmatpush3.bf16.msra.mxu0 %v820_v29 }
 0x428   :  { %1576 = vmatmul.mubr.bf16.vlgmr.msra.gmra.mrb[32].mxu0 %v2024_v14 }
 0x429   :  { %1579 = vmatprep.mubr.bf16.mxu0 %v2026_v15 }
 0x430   :  { %1580 = vmatmul.mubr.bf16.gmra.mrb[36].mxu0 %v2030_v18 }
 0x431   :  { %1583 = vmatprep.mubr.bf16.mxu0 %v2032_v19 }
 0x438   :  { %1584 = vmatmul.mubr.bf16.gmra.mrb[40].mxu0 %v2036_v20 }
 0x439   :  { %1587 = vmatprep.mubr.bf16.mxu0 %v2038_v21 }
 0x440   :  { %1588 = vmatmul.mubr.bf16.gmra.mrb[44].mxu0 %v2042_v22 }
 0x4fb   :  { %v1577_v32 = vpop.f32.mrb[32].mxu0 }
 0x4fc   :  { %v872_v33 = vpop.f32.mrb[33].mxu0 }
 0x4fd   :  { %v1578_v34 = vpop.f32.mrb[34].mxu0 }
 0x4fe   :  { %v936_v35 = vpack.c.bf16 %v1578_v34, %v1577_v32  ;;  %v875_v14 = vpop.f32.mrb[35].mxu0 }
 0x4ff   :  { %v935_v36 = vpack.c.bf16 %v875_v14, %v872_v33 }
 0x501   :  { %1607 = vmatprep.mubr.bf16.mxu1 %v935_v36 }
 0x502   :  { %1608 = vmatmul.mubr.bf16.vlgmr.msra.gmra.mrb[32].mxu1 %v936_v35 }
 0x503   :  { %v1581_v15 = vpop.f32.mrb[36].mxu0 }
 0x504   :  { %v888_v18 = vpop.f32.mrb[37].mxu0 }
 0x505   :  { %v1582_v19 = vpop.f32.mrb[38].mxu0 }
 0x506   :  { %v938_v37 = vpack.c.bf16 %v1582_v19, %v1581_v15  ;;  %v891_v20 = vpop.f32.mrb[39].mxu0 }
 0x507   :  { %v937_v38 = vpack.c.bf16 %v891_v20, %v888_v18 }
 0x509   :  { %1611 = vmatprep.mubr.bf16.mxu1 %v937_v38 }
 0x50a   :  { %1612 = vmatmul.mubr.bf16.gmra.mrb[36].mxu1 %v938_v37 }
 0x50b   :  { %v1585_v21 = vpop.f32.mrb[40].mxu0 }
 0x50c   :  { %v904_v22 = vpop.f32.mrb[41].mxu0 }
 0x50d   :  { %v1586_v39 = vpop.f32.mrb[42].mxu0 }
 0x50e   :  { %v940_v40 = vpack.c.bf16 %v1586_v39, %v1585_v21  ;;  %v907_v41 = vpop.f32.mrb[43].mxu0 }
 0x50f   :  { %v939_v42 = vpack.c.bf16 %v907_v41, %v904_v22 }
 0x511   :  { %1615 = vmatprep.mubr.bf16.mxu1 %v939_v42 }
 0x512   :  { %1616 = vmatmul.mubr.bf16.gmra.mrb[40].mxu1 %v940_v40 }
 0x513   :  { %v1589_v43 = vpop.f32.mrb[44].mxu0 }
 0x514   :  { %v920_v44 = vpop.f32.mrb[45].mxu0 }
 0x515   :  { %v1590_v45 = vpop.f32.mrb[46].mxu0 }
 0x516   :  { %v942_v46 = vpack.c.bf16 %v1590_v45, %v1589_v43  ;;  %v923_v47 = vpop.f32.mrb[47].mxu0 }
 0x517   :  { %v941_v48 = vpack.c.bf16 %v923_v47, %v920_v44 }
 0x519   :  { %1619 = vmatprep.mubr.bf16.mxu1 %v941_v48 }
 0x51a   :  { %1620 = vmatmul.mubr.bf16.gmra.mrb[44].mxu1 %v942_v46 }
 0x5d5   :  { %v1609_v52 = vpop.f32.mrb[32].mxu1 }
 0x5d6   :  { %v1040_v53 = vadd.f32 %v1609_v52, %v1326_v51  ;;  %v1031_v54 = vpop.f32.mrb[33].mxu1 }
 0x5d7   :  { %v1032_v56 = vadd.f32 %v1326_v51, %v1031_v54  ;;  %v1610_v55 = vpop.f32.mrb[34].mxu1 }
 0x5d8   :  { %v1043_v57 = vadd.f32 %v1610_v55, %v1326_v51  ;;  %v1034_v58 = vpop.f32.mrb[35].mxu1  ;;  %v1099_v59 = vsel %vm1096_vm0, %v1040_v53, -1e+30 }
 0x5d9   :  { %v1035_v60 = vadd.f32 %v1326_v51, %v1034_v58  ;;  %1117 = vmax.xlane.f32.xlu1 %v1099_v59  ;;  %v1097_v61 = vsel %vm1096_vm0, %v1032_v56, -1e+30 }
 0x5da   :  { %1113 = vmax.xlane.f32.xlu0 %v1097_v61  ;;  %v2079_v62 = vsel %vm1096_vm0, %v1043_v57, -1e+30 }
 0x5db   :  { %v2084_v0 = vsel %vm1096_vm0, %v1035_v60, -1e+30 }
 0x5dd   :  { %1119 = vmax.xlane.f32.xlu1 %v2079_v62  ;;  %v1613_v63 = vpop.f32.mrb[36].mxu1 }
 0x5de   :  { %v1056_v1 = vadd.f32 %v1613_v63, %v1326_v51  ;;  %1115 = vmax.xlane.f32.xlu0 %v2084_v0  ;;  %v1047_v2 = vpop.f32.mrb[37].mxu1 }
 0x5df   :  { %v1614_v3 = vpop.f32.mrb[38].mxu1  ;;  %v1048_v7 = vadd.f32 %v1326_v51, %v1047_v2 }
 0x5e0   :  { %v1059_v5 = vadd.f32 %v1614_v3, %v1326_v51  ;;  %v1050_v4 = vpop.f32.mrb[39].mxu1  ;;  %v1103_v6 = vsel %vm1096_vm0, %v1056_v1, -1e+30 }
 0x5e1   :  { %v1051_v8 = vadd.f32 %v1326_v51, %v1050_v4  ;;  %v2093_v11 = vsel %vm1096_vm0, %v1048_v7, -1e+30 }
 0x5e2   :  { %1125 = vmax.xlane.f32.xlu0 %v1103_v6  ;;  %v1104_v9 = vsel %vm1096_vm0, %v1059_v5, -1e+30 }
 0x5e3   :  { %1127 = vmax.xlane.f32.xlu1 %v1104_v9  ;;  %v1102_v16 = vsel %vm1096_vm0, %v1051_v8, -1e+30 }
 0x5e5   :  { %v1617_v10 = vpop.f32.mrb[40].mxu1 }
 0x5e6   :  { %v1072_v12 = vadd.f32 %v1617_v10, %v1326_v51  ;;  %1121 = vmax.xlane.f32.xlu0 %v2093_v11  ;;  %v1063_v13 = vpop.f32.mrb[41].mxu1 }
 0x5e7   :  { %1123 = vmax.xlane.f32.xlu1 %v1102_v16  ;;  %v1618_v17 = vpop.f32.mrb[42].mxu1  ;;  %v1064_v26 = vadd.f32 %v1326_v51, %v1063_v13 }
 0x5e8   :  { %v1075_v23 = vadd.f32 %v1618_v17, %v1326_v51  ;;  %v1066_v24 = vpop.f32.mrb[43].mxu1  ;;  %v2100_v25 = vsel %vm1096_vm0, %v1072_v12, -1e+30 }
 0x5e9   :  { %v1067_v27 = vadd.f32 %v1326_v51, %v1066_v24  ;;  %v2110_v30 = vsel %vm1096_vm0, %v1064_v26, -1e+30 }
 0x5ea   :  { %1133 = vmax.xlane.f32.xlu0 %v2100_v25  ;;  %v2105_v28 = vsel %vm1096_vm0, %v1075_v23, -1e+30 }
 0x5eb   :  { %1135 = vmax.xlane.f32.xlu1 %v2105_v28  ;;  %v2115_v32 = vsel %vm1096_vm0, %v1067_v27, -1e+30 }
 0x5ed   :  { %v1621_v29 = vpop.f32.mrb[44].mxu1 }
 0x5ee   :  { %1129 = vmax.xlane.f32.xlu0 %v2110_v30  ;;  %v1079_v31 = vpop.f32.mrb[45].mxu1  ;;  %v1088_v14 = vadd.f32 %v1621_v29, %v1326_v51 }
 0x5ef   :  { %v1080_v33 = vadd.f32 %v1326_v51, %v1079_v31  ;;  %1131 = vmax.xlane.f32.xlu1 %v2115_v32  ;;  %v1622_v34 = vpop.f32.mrb[46].mxu1 }
 0x5f0   :  { %v1082_v35 = vpop.f32.mrb[47].mxu1  ;;  %v1091_v18 = vadd.f32 %v1622_v34, %v1326_v51  ;;  %v2130_v37 = vsel %vm1096_vm0, %v1088_v14, -1e+30 }
 0x5f1   :  { %v1083_v36 = vadd.f32 %v1326_v51, %v1082_v35  ;;  %v2120_v15 = vsel %vm1096_vm0, %v1080_v33, -1e+30 }
 0x5f2   :  { %1137 = vmax.xlane.f32.xlu0 %v2120_v15  ;;  %v2135_v20 = vsel %vm1096_vm0, %v1091_v18, -1e+30 }
 0x5f3   :  { %v2125_v19 = vsel %vm1096_vm0, %v1083_v36, -1e+30 }
 0x5f4   :  { %1139 = vmax.xlane.f32.xlu1 %v2125_v19 }
 0x5f6   :  { %1141 = vmax.xlane.f32.xlu0 %v2130_v37 }
 0x5f8   :  { %1143 = vmax.xlane.f32.xlu1 %v2135_v20 }
 0x666   :  { %v1118_v38 = vpop.xlane.xlu1 %1117 }
 0x667   :  { %v1147_v21 = vsub.f32 %v1099_v59, %v1118_v38  ;;  %v1114_v22 = vpop.xlane.xlu0 %1113 }
 0x668   :  { %v1145_v39 = vsub.f32 %v1097_v61, %v1114_v22 }
 0x669   :  { %v1165_v40 = vmul.f32 1.442695, %v1147_v21 }
 0x66a   :  { %v1161_v41 = vmul.f32 1.442695, %v1145_v39  ;;  %v1120_v42 = vpop.xlane.xlu1 %1119 }
 0x66b   :  { %1673 = vpow2.f32 %v1165_v40  ;;  %v1148_v43 = vsub.f32 %v2079_v62, %v1120_v42  ;;  %v1116_v44 = vpop.xlane.xlu0 %1115 }
 0x66c   :  { %v1146_v45 = vsub.f32 %v2084_v0, %v1116_v44  ;;  %1675 = vpow2.f32 %v1161_v41 }
 0x66d   :  { %v1167_v46 = vmul.f32 1.442695, %v1148_v43 }
 0x66e   :  { %v1163_v47 = vmul.f32 1.442695, %v1146_v45 }
 0x66f   :  { %1677 = vpow2.f32 %v1167_v46  ;;  %v1126_v48 = vpop.xlane.xlu0 %1125 }
 0x670   :  { %v1151_v49 = vsub.f32 %v1103_v6, %v1126_v48  ;;  %v1128_v50 = vpop.xlane.xlu1 %1127  ;;  %1679 = vpow2.f32 %v1163_v47 }
 0x671   :  { %v1152_v51 = vsub.f32 %v1104_v9, %v1128_v50 }
 0x672   :  { %v1173_v52 = vmul.f32 1.442695, %v1151_v49 }
 0x673   :  { %v1175_v53 = vmul.f32 1.442695, %v1152_v51  ;;  %v1122_v54 = vpop.xlane.xlu0 %1121 }
 0x674   :  { %1681 = vpow2.f32 %v1173_v52  ;;  %v1149_v56 = vsub.f32 %v2093_v11, %v1122_v54  ;;  %v1124_v55 = vpop.xlane.xlu1 %1123 }
 0x675   :  { %v2141_v57 = vpop.eup %1673  ;;  %v1150_v58 = vsub.f32 %v1102_v16, %v1124_v55  ;;  %1683 = vpow2.f32 %v1175_v53 }
 0x676   :  { %v1169_v59 = vmul.f32 1.442695, %v1149_v56  ;;  %1197 = vadd.xlane.f32.xlu0 %v2141_v57  ;;  %v2144_v62 = vpop.eup %1675 }
 0x677   :  { %v1171_v60 = vmul.f32 1.442695, %v1150_v58  ;;  %v1134_v61 = vpop.xlane.xlu0 %1133 }
 0x678   :  { %1685 = vpow2.f32 %v1169_v59  ;;  %v1155_v63 = vsub.f32 %v2100_v25, %v1134_v61  ;;  %v1136_v0 = vpop.xlane.xlu1 %1135 }
 0x679   :  { %v2147_v1 = vpop.eup %1677  ;;  %v1156_v2 = vsub.f32 %v2105_v28, %v1136_v0  ;;  %1687 = vpow2.f32 %v1171_v60 }
 0x67a   :  { %v1181_v3 = vmul.f32 1.442695, %v1155_v63  ;;  %1199 = vadd.xlane.f32.xlu1 %v2147_v1  ;;  %1193 = vadd.xlane.f32.xlu0 %v2144_v62  ;;  %v2153_v8 = vpop.eup %1679 }
 0x67b   :  { %v1183_v5 = vmul.f32 1.442695, %v1156_v2  ;;  %v1130_v4 = vpop.xlane.xlu0 %1129 }
 0x67c   :  { %1689 = vpow2.f32 %v1181_v3  ;;  %v1153_v6 = vsub.f32 %v2110_v30, %v1130_v4  ;;  %v1132_v7 = vpop.xlane.xlu1 %1131 }
 0x67d   :  { %v1154_v9 = vsub.f32 %v2115_v32, %v1132_v7  ;;  %1691 = vpow2.f32 %v1183_v5 }
 0x67e   :  { %v2156_v10 = vpop.eup %1681  ;;  %v1177_v11 = vmul.f32 1.442695, %v1153_v6  ;;  %1195 = vadd.xlane.f32.xlu1 %v2153_v8 }
 0x67f   :  { %v1179_v12 = vmul.f32 1.442695, %v1154_v9  ;;  %1205 = vadd.xlane.f32.xlu0 %v2156_v10  ;;  %v1138_v13 = vpop.xlane.xlu0 %1137  ;;  %v2161_v17 = vpop.eup %1683 }
 0x680   :  { %1693 = vpow2.f32 %v1177_v11  ;;  %v1157_v16 = vsub.f32 %v2120_v15, %v1138_v13 }
 0x681   :  { %v1140_v23 = vpop.xlane.xlu1 %1139  ;;  %1695 = vpow2.f32 %v1179_v12 }
 0x682   :  { %v2163_v24 = vpop.eup %1685  ;;  %v1185_v25 = vmul.f32 1.442695, %v1157_v16  ;;  %v1158_v26 = vsub.f32 %v2125_v19, %v1140_v23  ;;  %1207 = vadd.xlane.f32.xlu1 %v2161_v17 }
 0x683   :  { %1201 = vadd.xlane.f32.xlu0 %v2163_v24  ;;  %v1142_v27 = vpop.xlane.xlu0 %1141  ;;  %v2169_v30 = vpop.eup %1687 }
 0x684   :  { %1697 = vpow2.f32 %v1185_v25  ;;  %v1187_v28 = vmul.f32 1.442695, %v1158_v26  ;;  %v1159_v29 = vsub.f32 %v2130_v37, %v1142_v27 }
 0x685   :  { %v1144_v31 = vpop.xlane.xlu1 %1143 }
 0x686   :  { %v2171_v32 = vpop.eup %1689  ;;  %1699 = vpow2.f32 %v1187_v28  ;;  %v1189_v33 = vmul.f32 1.442695, %v1159_v29  ;;  %v1160_v34 = vsub.f32 %v2135_v20, %v1144_v31  ;;  %1203 = vadd.xlane.f32.xlu1 %v2169_v30 }
 0x687   :  { %1213 = vadd.xlane.f32.xlu0 %v2171_v32  ;;  %v2176_v14 = vpop.eup %1691 }
 0x688   :  { %1701 = vpow2.f32 %v1189_v33  ;;  %v1191_v35 = vmul.f32 1.442695, %v1160_v34 }
 0x68a   :  { %v2178_v36 = vpop.eup %1693  ;;  %1703 = vpow2.f32 %v1191_v35  ;;  %1215 = vadd.xlane.f32.xlu1 %v2176_v14 }
 0x68b   :  { %1209 = vadd.xlane.f32.xlu0 %v2178_v36  ;;  %v2182_v15 = vpop.eup %1695 }
 0x68e   :  { %v2184_v18 = vpop.eup %1697  ;;  %1211 = vadd.xlane.f32.xlu1 %v2182_v15 }
 0x68f   :  { %1217 = vadd.xlane.f32.xlu0 %v2184_v18 }
 0x690   :  { %v2188_v19 = vpop.eup %1699 }
 0x692   :  { %v2190_v37 = vpop.eup %1701  ;;  %1219 = vadd.xlane.f32.xlu1 %v2188_v19 }
 0x693   :  { %1221 = vadd.xlane.f32.xlu0 %v2190_v37 }
 0x694   :  { %v2194_v20 = vpop.eup %1703 }
 0x696   :  { %1223 = vadd.xlane.f32.xlu1 %v2194_v20 }
 0x703   :  { %v1198_v38 = vpop.xlane.xlu0 %1197 }
 0x704   :  { %1705 = vrcp.f32 %v1198_v38 }
 0x707   :  { %v1200_v21 = vpop.xlane.xlu1 %1199  ;;  %v1194_v22 = vpop.xlane.xlu0 %1193 }
 0x708   :  { %1707 = vrcp.f32 %v1200_v21 }
 0x709   :  { %1709 = vrcp.f32 %v1194_v22 }
 0x70b   :  { %v1196_v39 = vpop.xlane.xlu1 %1195 }
 0x70c   :  { %1711 = vrcp.f32 %v1196_v39  ;;  %v1206_v40 = vpop.xlane.xlu0 %1205 }
 0x70d   :  { %1713 = vrcp.f32 %v1206_v40 }
 0x70e   :  { %v1706_v41 = vpop.eup %1705 }
 0x70f   :  { %v1243_v42 = vmul.f32 %v1706_v41, %v2141_v57  ;;  %v1208_v43 = vpop.xlane.xlu1 %1207 }
 0x710   :  { %1715 = vrcp.f32 %v1208_v43  ;;  %v1202_v44 = vpop.xlane.xlu0 %1201 }
 0x711   :  { %1259 = vst [vmem:[#allocation11 + $0x10] sm:$0xff] %v1243_v42  ;;  %1717 = vrcp.f32 %v1202_v44 }
 0x712   :  { %v1708_v45 = vpop.eup %1707 }
 0x713   :  { %v1710_v46 = vpop.eup %1709  ;;  %v1244_v47 = vmul.f32 %v1708_v45, %v2147_v1  ;;  %v1204_v48 = vpop.xlane.xlu1 %1203 }
 0x714   :  { %v1241_v49 = vmul.f32 %v1710_v46, %v2144_v62  ;;  %1719 = vrcp.f32 %v1204_v48  ;;  %v1214_v50 = vpop.xlane.xlu0 %1213 }
 0x715   :  { %1260 = vst [vmem:[#allocation11 + $0x18] sm:$0xff] %v1244_v47  ;;  %1721 = vrcp.f32 %v1214_v50 }
 0x716   :  { %v1712_v51 = vpop.eup %1711  ;;  %1257 = vst [vmem:[#allocation11] sm:$0xff] %v1241_v49 }
 0x717   :  { %v1714_v52 = vpop.eup %1713  ;;  %v1242_v53 = vmul.f32 %v1712_v51, %v2153_v8  ;;  %v1216_v54 = vpop.xlane.xlu1 %1215 }
 0x718   :  { %v1247_v56 = vmul.f32 %v1714_v52, %v2156_v10  ;;  %1723 = vrcp.f32 %v1216_v54  ;;  %v1210_v55 = vpop.xlane.xlu0 %1209 }
 0x719   :  { %1258 = vst [vmem:[#allocation11 + $0x8] sm:$0xff] %v1242_v53  ;;  %1725 = vrcp.f32 %v1210_v55 }
 0x71a   :  { %v1716_v57 = vpop.eup %1715  ;;  %1263 = vst [vmem:[#allocation11 + $0x30] sm:$0xff] %v1247_v56 }
 0x71b   :  { %v1718_v58 = vpop.eup %1717  ;;  %v1248_v59 = vmul.f32 %v1716_v57, %v2161_v17  ;;  %v1212_v60 = vpop.xlane.xlu1 %1211 }
 0x71c   :  { %v1245_v61 = vmul.f32 %v1718_v58, %v2163_v24  ;;  %1727 = vrcp.f32 %v1212_v60  ;;  %v1218_v62 = vpop.xlane.xlu0 %1217 }
 0x71d   :  { %1264 = vst [vmem:[#allocation11 + $0x38] sm:$0xff] %v1248_v59  ;;  %1729 = vrcp.f32 %v1218_v62 }
 0x71e   :  { %v1720_v63 = vpop.eup %1719  ;;  %1261 = vst [vmem:[#allocation11 + $0x20] sm:$0xff] %v1245_v61 }
 0x71f   :  { %v1722_v0 = vpop.eup %1721  ;;  %v1246_v1 = vmul.f32 %v1720_v63, %v2169_v30  ;;  %v1220_v2 = vpop.xlane.xlu1 %1219 }
 0x720   :  { %v1251_v3 = vmul.f32 %v1722_v0, %v2171_v32  ;;  %1731 = vrcp.f32 %v1220_v2  ;;  %v1222_v5 = vpop.xlane.xlu0 %1221 }
 0x721   :  { %1262 = vst [vmem:[#allocation11 + $0x28] sm:$0xff] %v1246_v1  ;;  %1733 = vrcp.f32 %v1222_v5 }
 0x722   :  { %v1724_v4 = vpop.eup %1723  ;;  %1267 = vst [vmem:[#allocation11 + $0x50] sm:$0xff] %v1251_v3 }
 0x723   :  { %v1726_v6 = vpop.eup %1725  ;;  %v1252_v7 = vmul.f32 %v1724_v4, %v2176_v14  ;;  %v1224_v8 = vpop.xlane.xlu1 %1223 }
 0x724   :  { %v1249_v9 = vmul.f32 %v1726_v6, %v2178_v36  ;;  %1735 = vrcp.f32 %v1224_v8 }
 0x725   :  { %1268 = vst [vmem:[#allocation11 + $0x58] sm:$0xff] %v1252_v7 }
 0x726   :  { %v1728_v10 = vpop.eup %1727  ;;  %1265 = vst [vmem:[#allocation11 + $0x40] sm:$0xff] %v1249_v9 }
 0x727   :  { %v1730_v11 = vpop.eup %1729  ;;  %v1250_v12 = vmul.f32 %v1728_v10, %v2182_v15 }
 0x728   :  { %v1253_v13 = vmul.f32 %v1730_v11, %v2184_v18 }
 0x729   :  { %1266 = vst [vmem:[#allocation11 + $0x48] sm:$0xff] %v1250_v12 }
 0x72a   :  { %v1732_v16 = vpop.eup %1731  ;;  %1269 = vst [vmem:[#allocation11 + $0x60] sm:$0xff] %v1253_v13 }
 0x72b   :  { %v1734_v17 = vpop.eup %1733  ;;  %v1254_v23 = vmul.f32 %v1732_v16, %v2188_v19 }
 0x72c   :  { %v1255_v24 = vmul.f32 %v1734_v17, %v2190_v37 }
 0x72d   :  { %1270 = vst [vmem:[#allocation11 + $0x68] sm:$0xff] %v1254_v23 }
 0x72e   :  { %v1736_v25 = vpop.eup %1735  ;;  %1271 = vst [vmem:[#allocation11 + $0x70] sm:$0xff] %v1255_v24 }
 0x72f   :  { %v1256_v26 = vmul.f32 %v1736_v25, %v2194_v20 }
 0x731   :  { %1272 = vst [vmem:[#allocation11 + $0x78] sm:$0xff] %v1256_v26 }
 0x732   :  { %1858 = shalt.err (!%p1855_p2)
}
 0x733   :  { %s1859_s26 = scalar_lea.hbm %s2233_s8, 2048 }
 0x734   :  { %p1860_p3 = scmp.ne.s32.totalorder %s2233_s8, %s1859_s26  ;;  %p1863_p4 = scmp.lt.u32.totalorder %s1859_s26, %s2233_s8 }
 0x736   :  { %p1865_p5 = pnand %p1863_p4, %p1860_p3 }
 0x738   :  { %1868 = shalt.err (!%p1865_p5)
}
 0x739   :  { %s1885_s0 = smov 128   ;;  %s1886_s9 = smov 8  }
 0x73a   :  { %1284 = dma.vmem_to_hbm [thread:$0]  %s1279_s22, 2048, %s2233_s8, [#allocation4], %s1885_s0, %s1885_s0, %s1886_s9  }
 0x73b   :  { %1875 = dma.done.wait [#allocation4], 2048  }
 0x73c   :  { %1876 = vsyncadd [#allocation4], 4294965248 }
 0x73d   :  { %1288 = vsyncpa [#allocation3], 1 }
 0x73e   :  { %1289 = vsyncpa [#allocation6], 1 }
 0x73f   :  { %1290 = vsyncpa [#allocation9], 1 }
 0x740   :  { %1291 = vsyncpa [#allocation4], 1 }

</bundles_post_ra>
